<compile_context>
chip_gen: v7x
topology: tpu7x:2x2x1
jax: 0.10.0
libtpu: 0.0.40
codegen_flags: <defaults>
</compile_context>

<pallas_src>
from functools import partial

import numpy as np
import jax
import jax.numpy as jnp
from jax.experimental import pallas as pl
from jax.experimental.pallas import tpu as pltpu


# --------------------------------------------------------------------------
# Deterministic parameter construction (numpy reimplementation of __init__)
# --------------------------------------------------------------------------
def transition_legs(N):
    """HiPPO-LegS continuous-time (A, B)."""
    q = np.arange(N, dtype=np.float64)
    col, row = np.meshgrid(q, q)
    r = 2 * q + 1
    M = -(np.where(row >= col, r, 0) - np.diag(q))
    T = np.sqrt(np.diag(2 * q + 1))
    A = T @ M @ np.linalg.inv(T)
    B = np.diag(T)[:, None]
    return A, B


def eval_legendre_all(N, x):
    """P_n(x) for n = 0..N-1 via Bonnet recurrence.  Returns (N, len(x))."""
    x = np.asarray(x, dtype=np.float64)
    P = np.zeros((N, x.shape[0]), dtype=np.float64)
    P[0] = 1.0
    if N > 1:
        P[1] = x
    for n in range(1, N - 1):
        P[n + 1] = ((2 * n + 1) * x * P[n] - n * P[n - 1]) / (n + 1)
    return P


def init_leg_s(N, max_length):
    """Bilinear-discretized, length-scaled HiPPO-LegS operators + eval matrices.

    Returns (A_stacked, B_stacked, E, Et) with E: (L, N) and Et = E^T: (N, L)
    so the kernel gets a lane-dense output without any runtime transpose.
    """
    A, B = transition_legs(N)
    B = B.squeeze(-1)
    I = np.eye(N)
    A_stacked = np.empty((max_length, N, N), dtype=np.float64)
    B_stacked = np.empty((max_length, N), dtype=np.float64)
    for t in range(1, max_length + 1):
        At = A / t
        Bt = B / t
        A_stacked[t - 1] = np.linalg.solve(I - At / 2, I + At / 2)
        B_stacked[t - 1] = np.linalg.solve(I - At / 2, Bt)
    vals = 2.0 * np.linspace(0.0, 1.0, max_length) - 1.0
    E = (B[:, None] * eval_legendre_all(N, vals)).T              # (L, N)
    E = E.astype(np.float32)
    Et = np.ascontiguousarray(E.T)                               # (N, L)
    return (A_stacked.astype(np.float32),
            B_stacked.astype(np.float32),
            E, Et)


def encode_leg_s(f, A_stacked, B_stacked):
    """c[t] = A[t] @ c[t-1] + f[t] * B[t],  c[-1] = 0.   Returns (L, N) float32."""
    L = f.shape[0]
    N = A_stacked.shape[-1]
    u = f[:, None].astype(np.float32) * B_stacked[:L]            # (L, N)
    c = np.zeros((N,), dtype=np.float32)
    cs = []
    for t in range(L):
        c = A_stacked[t] @ c + u[t]
        cs.append(c)
    return np.stack(cs, axis=0).astype(np.float32)               # (L, N)


# --------------------------------------------------------------------------
# Pallas kernel: forward() hot path   out = E @ c[-1]   (single grid step)
# --------------------------------------------------------------------------
def _decode_kernel(c_ref, et_ref, o_ref, *, row):
    # c_ref : (rb, N)  coefficient block whose row `row` is c[-1]
    # et_ref: (N, L)   full E^T slab (lane-dense on L)
    # o_ref : (1, L)   output (lane-dense on L)
    c_last = c_ref[pl.ds(row, 1), :]                             # (1, N) static slice
    o_ref[...] = jnp.dot(
        c_last, et_ref[...], preferred_element_type=jnp.float32
    ).astype(o_ref.dtype)


def _hippo_forward_impl(Et, c):
    """out = E @ c[-1]  -> shape (L,).  Single pallas_call, single grid step."""
    N, L = Et.shape
    assert c.shape == (L, N)

    # Select the block of c containing the final row via the index_map
    # (no eager slice dispatch).  Blocks equal full array dims elsewhere,
    # so any L is legal (no L % 128 requirement).
    if L % 8 == 0:
        rb, blk_idx, row = 8, L // 8 - 1, 7          # 8-row block ending at L-1
    else:
        rb, blk_idx, row = L, 0, L - 1               # fall back to full-c block

    out = pl.pallas_call(
        partial(_decode_kernel, row=row),
        out_shape=jax.ShapeDtypeStruct((1, L), Et.dtype),
        grid_spec=pltpu.PrefetchScalarGridSpec(
            num_scalar_prefetch=0,
            grid=(1,),
            in_specs=[
                pl.BlockSpec((rb, N), lambda j: (blk_idx, 0)),   # block holding c[-1]
                pl.BlockSpec((N, L), lambda j: (0, 0)),          # whole E^T slab
            ],
            out_specs=pl.BlockSpec((1, L), lambda j: (0, 0)),
        ),
        compiler_params=pltpu.CompilerParams(
            dimension_semantics=("arbitrary",),
        ),
        cost_estimate=pl.CostEstimate(
            flops=2 * L * N,
            transcendentals=0,
            bytes_accessed=4 * (N * L + rb * N + L),
        ),
    )(c, Et)
    return out[0]                                                # (L,)


hippo_forward = jax.jit(_hippo_forward_impl)


# --------------------------------------------------------------------------
if __name__ == "__main__":
    L, N = 256, 64                 # len(f) = 256 timesteps, N = 64 HiPPO order

    # deterministic synthetic timeseries that the module was "fit" to
    key = jax.random.PRNGKey(0)
    f = np.asarray(jax.device_get(jax.random.normal(key, (L,), dtype=jnp.float32)))

    # __init__ (parameter setup, plain numpy glue)
    # TODO(synk): the linear solves / sequential LegS recurrence in __init__ have
    # no clean single-kernel Pallas equivalent; they stay as host-side glue.
    A_st, B_st, E, Et = init_leg_s(N, max_length=L)
    c = encode_leg_s(f, A_st, B_st)            # nn.Parameter c, shape (L, N)

    E_j = jnp.asarray(E)
    Et_j = jnp.asarray(Et)
    c_j = jnp.asarray(c)

    # forward() via Pallas kernel
    out = jax.block_until_ready(hippo_forward(Et_j, c_j))
    assert out.shape == (L,) and out.dtype == jnp.float32

    # reference with the literal torch semantics:
    #   (E @ c.unsqueeze(-1)).squeeze(-1)[-1]
    ref = jnp.einsum("ln,tn->tl", E_j, c_j)[-1]
    np.testing.assert_allclose(np.asarray(out), np.asarray(ref), rtol=5e-3, atol=5e-3)

    print("KERNEL_OK")
</pallas_src>

<mosaic_0001>
module attributes {stable_mosaic.version = 11 : i64} {
  func.func @_decode_kernel(%arg0: i32, %arg1: memref<8x64xf32, #tpu.memory_space<vmem>>, %arg2: memref<64x256xf32, #tpu.memory_space<vmem>>, %arg3: memref<1x256xf32, #tpu.memory_space<vmem>>) attributes {dimension_semantics = [#tpu.dimension_semantics<arbitrary>], iteration_bounds = array<i64: 1>, scalar_prefetch = 0 : i64, scratch_operands = 0 : i64, tpu.core_type = #tpu.core_type<tc>, window_params = [{transform_indices = @transform_0, window_bounds = array<i64: 8, 64>}, {pipeline_mode = #tpu.pipeline_mode<synchronous>, transform_indices = @transform_1, window_bounds = array<i64: 64, 256>}, {pipeline_mode = #tpu.pipeline_mode<synchronous>, transform_indices = @transform_2, window_bounds = array<i64: 1, 256>}]} {
    %c7 = arith.constant 7 : index
    %c0 = arith.constant 0 : index
    %0 = vector.load %arg1[%c7, %c0] : memref<8x64xf32, #tpu.memory_space<vmem>>, vector<1x64xf32>
    %c0_0 = arith.constant 0 : index
    %c0_1 = arith.constant 0 : index
    %1 = vector.load %arg2[%c0_0, %c0_1] : memref<64x256xf32, #tpu.memory_space<vmem>>, vector<64x256xf32>
    %cst = arith.constant dense<0.000000e+00> : vector<1x256xf32>
    %2 = tpu.matmul %0, %1, %cst {dimension_numbers = #tpu.dot_dimension_numbers<[1], [0], [0], [1], [0, 0, 1, 1], [], []>} : vector<1x64xf32>, vector<64x256xf32>, vector<1x256xf32> -> vector<1x256xf32>
    %c0_2 = arith.constant 0 : index
    %c0_3 = arith.constant 0 : index
    %3 = vector.load %arg3[%c0_2, %c0_3] : memref<1x256xf32, #tpu.memory_space<vmem>>, vector<1x256xf32>
    tpu.vector_store %arg3[%c0_2, %c0_3], %2 {strides = array<i32>} : memref<1x256xf32, #tpu.memory_space<vmem>>, vector<1x256xf32>,
    return
  }
  func.func @transform_0(%arg0: i32) -> (i32, i32) {
    %c31_i32 = arith.constant 31 : i32
    %c0_i32 = arith.constant 0 : i32
    %c0_i32_0 = arith.constant 0 : i32
    return %c31_i32, %c0_i32 : i32, i32
  }
  func.func @transform_1(%arg0: i32) -> (i32, i32) {
    %c0_i32 = arith.constant 0 : i32
    %c0_i32_0 = arith.constant 0 : i32
    %c0_i32_1 = arith.constant 0 : i32
    return %c0_i32, %c0_i32_0 : i32, i32
  }
  func.func @transform_2(%arg0: i32) -> (i32, i32) {
    %c0_i32 = arith.constant 0 : i32
    %c0_i32_0 = arith.constant 0 : i32
    %c0_i32_1 = arith.constant 0 : i32
    return %c0_i32, %c0_i32_0 : i32, i32
  }
}

</mosaic_0001>

<bundles_post_ra>
// kernel: _hippo_forward_impl.1
= control target key start
LH: loop header
LB: loop body
LE: loop exit
PB: predicated region body
PF: predicated region fallthrough
CT: control target
= control target key end

     0   :  { %v189_v7 = vmov 0.0   ;;  %s270_s0 = inlined_call_operand.vmem [shape: f32[256,64], index: 0, kind: input, shape index: {}]   ;;  %s271_s1 = inlined_call_operand.vmem [shape: f32[64,256], index: 1, kind: input, shape index: {}]   ;;  %s272_s2 = inlined_call_operand.hbm [shape: f32[1,256], index: 2, kind: output, shape index: {}]  }
   0x1   :  { %v17_v0 = vld [vmem:[%s271_s1 + $0x8] sm:$0xff]  ;;  %v19_v1 = vld [vmem:[%s271_s1 + $0x18] sm:$0xff]  ;;  %v16_v2 = vld [vmem:[%s271_s1] sm:$0xff]  ;;  %100 = vmatprep.mubr.f32.mxu0 %v189_v7 }
   0x2   :  { %v146_v3 = vpack.c.bf16 %v19_v1, %v17_v0  ;;  %v18_v4 = vld [vmem:[%s271_s1 + $0x10] sm:$0xff]  ;;  %v21_v5 = vld [vmem:[%s271_s1 + $0x28] sm:$0xff]  ;;  %v23_v6 = vld [vmem:[%s271_s1 + $0x38] sm:$0xff] }
   0x3   :  { %v148_v8 = vpack.c.bf16 %v18_v4, %v16_v2  ;;  %v150_v9 = vpack.c.bf16 %v23_v6, %v21_v5  ;;  %v20_v10 = vld [vmem:[%s271_s1 + $0x20] sm:$0xff]  ;;  %v22_v11 = vld [vmem:[%s271_s1 + $0x30] sm:$0xff]  ;;  %v25_v12 = vld [vmem:[%s271_s1 + $0x48] sm:$0xff] }
   0x4   :  { %147 = vmatprep.subr.bf16.mxu0 %v146_v3  ;;  %v27_v13 = vld [vmem:[%s271_s1 + $0x58] sm:$0xff]  ;;  %v152_v14 = vpack.c.bf16 %v22_v11, %v20_v10  ;;  %v24_v16 = vld [vmem:[%s271_s1 + $0x40] sm:$0xff]  ;;  %v26_v17 = vld [vmem:[%s271_s1 + $0x50] sm:$0xff] }
   0x5   :  { %149 = vmatpush1.bf16.msra.mxu0 %v148_v8  ;;  %v154_v15 = vpack.c.bf16 %v27_v13, %v25_v12 }
   0x6   :  { %151 = vmatprep.subr.bf16.mxu0 %v150_v9 }
   0x7   :  { %7 = vsyncpa [#allocation3], 0  ;;  %v29_v18 = vld [vmem:[%s271_s1 + $0x68] sm:$0xff]  ;;  %v31_v19 = vld [vmem:[%s271_s1 + $0x78] sm:$0xff]  ;;  %v156_v20 = vpack.c.bf16 %v26_v17, %v24_v16  ;;  %vm32_vm0 = vcmask 523264   ;;  %v113_v28 = vlaneseq }
   0x8   :  { %v158_v21 = vpack.c.bf16 %v31_v19, %v29_v18  ;;  %v28_v22 = vld [vmem:[%s271_s1 + $0x60] sm:$0xff]  ;;  %v30_v23 = vld [vmem:[%s271_s1 + $0x70] sm:$0xff]  ;;  %v144_v25 = vld [vmem:[%s270_s0 + $0xff] sm:$0x1]  ;;  %v190_v26 = vmov 1966171168  }
   0x9   :  { %153 = vmatpush1.bf16.msra.mxu0 %v152_v14  ;;  %v160_v24 = vpack.c.bf16 %v30_v23, %v28_v22  ;;  %v111_v27 = vunpack.c.l.s4 %v190_v26  ;;  %v114_v30 = vshrl.u32 %v113_v28, 7  ;;  %s191_s1 = smov [#allocation2]   ;;  %vm127_vm1 = vcmp.lt.s32.totalorder %v113_v28, 256 }
   0xa   :  { %155 = vmatprep.subr.bf16.mxu0 %v154_v15  ;;  %s136_s15 = sshll.u32 %s191_s1, 4  ;;  %s137_s15 = int_to_ptr.vmem [resolvable:$true] %s136_s15 }
   0xb   :  { %v112_v29 = vunpack.c.0.s8 %v111_v27  ;;  %s165_s16 = scalar_lea.vmem %s137_s15, 32  ;;  %p170_p1 = scmp.lt.s32.totalorder %s137_s15, %s137_s15 }
   0xc   :  { %p166_p0 = scmp.ne.s32.totalorder %s137_s15, %s165_s16  ;;  %p171_p2 = scmp.lt.s32.totalorder %s165_s16, %s165_s16 }
   0xd   :  { %157 = vmatpush1.bf16.msra.mxu0 %v156_v20  ;;  %v115_v32 = vsub.s32 %v112_v29, %v114_v30 }
   0xe   :  { %159 = vmatprep.subr.bf16.mxu0 %v158_v21  ;;  %p172_p3 = por %p171_p2, %p170_p1 }
  0x10   :  { %p173_p4 = pnand %p172_p3, %p166_p0 }
  0x11   :  { %161 = vmatpush1.bf16.msra.mxu0 %v160_v24 }
  0x14   :  { %145 = vmatmul.mubr.msk.f32.vlgmr.msra.gmra.mrb[0].mxu0 %vm32_vm0, %v144_v25 }
  0xe7   :  { %v102_v31 = vpop.f32.mrb[0].mxu0 }
  0xe8   :  { %v104_v33 = vpop.f32.mrb[1].mxu0 }
  0xe9   :  { %v109_v34 = vcombine.low %v102_v31, %v104_v33 }
  0xeb   :  { %v116_v35 = vrot.slane %v109_v34, %v115_v32 }
  0xed   :  { %v123_v36 = vrot.slane %v116_v35, %v115_v32 }
  0xef   :  { %129 = vst.msk [vmem:[#allocation2] sm:$0x3] %vm127_vm1, %v123_v36 }
  0xf0   :  { %176 = shalt.err (!%p173_p4)
}
  0xf1   :  { %s177_s18 = scalar_lea.hbm %s272_s2, 32 }
  0xf2   :  { %p178_p5 = scmp.ne.s32.totalorder %s272_s2, %s177_s18  ;;  %p181_p6 = scmp.lt.u32.totalorder %s177_s18, %s272_s2 }
  0xf4   :  { %p183_p7 = pnand %p181_p6, %p178_p5 }
  0xf6   :  { %186 = shalt.err (!%p183_p7)
}
  0xf7   :  { %139 = dma.vmem_to_hbm [thread:$0]  %s137_s15, 32, %s272_s2, [#allocation3]  }
  0xf8   :  { %187 = dma.done.wait [#allocation3], 32  }
  0xf9   :  { %188 = vsyncadd [#allocation3], 4294967264 }
  0xfa   :  { %143 = vsyncpa [#allocation3], 1 }

</bundles_post_ra>
